<compile_context>
chip_gen: v6e
topology: v6e:2x2x1
jax: 0.10.0
libtpu: 0.0.40
codegen_flags: <defaults>
</compile_context>

<pallas_src>
import functools

import jax
import jax.numpy as jnp
import numpy as np
from jax import lax
from jax.experimental import pallas as pl
from jax.experimental.pallas import tpu as pltpu

_LANE = 128
_SUBLANE = 8
_MXU_DTYPE = jnp.bfloat16
_EPS = 1e-12  # matches torch.nn.functional.normalize default


def _round_up(n, m):
    return ((n + m - 1) // m) * m


def adsnet_kernel(x_ref, w_ref, protos_ref, out_ref, *, num_proto, k_pad, alpha):
    # x_ref:      (TILE_B, C)          bf16  flattened input features
    # w_ref:      (C_out, C_in)        bf16  1x1 conv weight (untransposed)
    # protos_ref: (C, P * K_pad)       bf16  pre-normalized, pre-transposed protos
    # out_ref:    (TILE_B, K_pad)      f32   lane-dense padded class scores
    x = x_ref[...]
    w = w_ref[...]

    # 1x1 conv == x @ w.T; contract on C_in (dim 1 of both) without
    # materializing a transpose -- the MXU handles the transposed-rhs form.
    pre = lax.dot_general(
        x, w, dimension_numbers=(((1,), (1,)), ((), ())),
        preferred_element_type=jnp.float32)
    feat = jax.nn.sigmoid(pre)                                   # f32 (VPU/EUP)

    # Row L2-normalize via rsqrt (EUP slot) instead of sqrt + divide.
    ssq = jnp.sum(feat * feat, axis=-1, keepdims=True)
    feat_n = (feat * lax.rsqrt(jnp.maximum(ssq, _EPS * _EPS))).astype(x.dtype)

    # One MXU matmul covers every prototype group (lane-dense N = P*K_pad);
    # the per-group max is a VPU maximum over lane-aligned static slices.
    scores = jnp.dot(feat_n, protos_ref[...],
                     preferred_element_type=jnp.float32)         # (TILE_B, P*K_pad)
    cls = scores[:, :k_pad]
    for p in range(1, num_proto):
        cls = jnp.maximum(cls, scores[:, p * k_pad:(p + 1) * k_pad])

    out_ref[...] = jax.nn.sigmoid(cls * (1.0 / alpha)).astype(out_ref.dtype)


def adsnet_classifier_forward(x_nchw, conv_weight, protos, *, num_proto,
                              num_classes, alpha=0.05):
    """x_nchw: (B, C, 1, 1); conv_weight: (C, C, 1, 1); protos: (P*K, C)."""
    B, C, H, W = x_nchw.shape
    assert H == 1 and W == 1, "flattened features must have exactly `channels` dims"
    assert conv_weight.shape == (C, C, 1, 1)
    assert protos.shape == (num_proto * num_classes, C)

    k_pad = _round_up(num_classes, _LANE)

    # ---- constant-weight preprocessing (cacheable: these are parameters) ----
    w2d = conv_weight.reshape(C, C).astype(_MXU_DTYPE)            # (C_out, C_in)
    protos_f32 = protos.astype(jnp.float32)
    pnorm = jnp.sqrt(jnp.sum(protos_f32 * protos_f32, axis=-1, keepdims=True))
    protos_n = protos_f32 / jnp.maximum(pnorm, _EPS)              # F.normalize
    # (P*K, C) -> (P, K, C) -> (P, C, K) -> pad K -> (C, P*K_pad) lane-dense slab.
    protos_t = protos_n.reshape(num_proto, num_classes, C).transpose(0, 2, 1)
    protos_t = jnp.pad(protos_t, ((0, 0), (0, 0), (0, k_pad - num_classes)))
    protos_t = protos_t.transpose(1, 0, 2).reshape(C, num_proto * k_pad)
    protos_t = protos_t.astype(_MXU_DTYPE)                        # (C, P*K_pad)

    # ---- activation preprocessing ----
    x2d = x_nchw.reshape(B, C).astype(_MXU_DTYPE)
    if B > _LANE:
        b_pad = _round_up(B, _LANE)
        tile_b = _LANE
    else:
        b_pad = _round_up(B, _SUBLANE)
        tile_b = b_pad
    if b_pad != B:
        x2d = jnp.pad(x2d, ((0, b_pad - B), (0, 0)))
    grid = (b_pad // tile_b,)

    kernel = functools.partial(adsnet_kernel, num_proto=num_proto, k_pad=k_pad,
                               alpha=alpha)

    # VMEM budget: double-buffered x/out tiles + (possibly double-buffered)
    # resident weight & prototypes + slack.  Capped so realistic channel counts
    # stay inside v7x's 64 MiB physical VMEM.
    itemsize = jnp.dtype(_MXU_DTYPE).itemsize
    vmem_est = (2 * (tile_b * C * itemsize + tile_b * k_pad * 4)
                + 2 * (C * C + num_proto * C * k_pad) * itemsize
                + (4 << 20))
    vmem_limit = int(min(max(vmem_est, 32 << 20), 48 << 20))

    out_padded = pl.pallas_call(
        kernel,
        out_shape=jax.ShapeDtypeStruct((b_pad, k_pad), jnp.float32),
        grid=grid,
        in_specs=[
            pl.BlockSpec((tile_b, C), lambda i: (i, 0)),                     # x tiles
            pl.BlockSpec((C, C), lambda i: (0, 0)),                          # weight (resident)
            pl.BlockSpec((C, num_proto * k_pad), lambda i: (0, 0)),          # protos (resident)
        ],
        out_specs=pl.BlockSpec((tile_b, k_pad), lambda i: (i, 0)),
        compiler_params=pltpu.CompilerParams(
            dimension_semantics=("parallel",),
            vmem_limit_bytes=vmem_limit,
        ),
    )(x2d, w2d, protos_t)

    return out_padded[:B, :num_classes]


def _reference_forward(x_nchw, conv_weight, protos, *, num_proto, num_classes,
                       alpha=0.05, mxu_dtype=jnp.float32):
    """Pure-JAX reference; mxu_dtype mirrors the kernel's MXU operand casts."""
    B, C, _, _ = x_nchw.shape
    x2d = x_nchw.reshape(B, C).astype(mxu_dtype)
    w2d = conv_weight.reshape(C, C).astype(mxu_dtype)
    pre = lax.dot_general(x2d, w2d, dimension_numbers=(((1,), (1,)), ((), ())),
                          preferred_element_type=jnp.float32)
    feat = jax.nn.sigmoid(pre)
    fnorm = jnp.sqrt(jnp.sum(feat * feat, axis=-1, keepdims=True))
    feat_n = (feat / jnp.maximum(fnorm, _EPS)).astype(mxu_dtype)
    protos_f32 = protos.astype(jnp.float32)
    pnorm = jnp.sqrt(jnp.sum(protos_f32 * protos_f32, axis=-1, keepdims=True))
    protos_n = (protos_f32 / jnp.maximum(pnorm, _EPS)).astype(mxu_dtype)
    scores = jnp.dot(feat_n, protos_n.T, preferred_element_type=jnp.float32)
    cls = jnp.max(scores.reshape(B, num_proto, num_classes), axis=1)
    return jax.nn.sigmoid(cls / alpha)


if __name__ == "__main__":
    # Small shapes consistent with the module (channels scaled down from
    # 512*block_expansion to 128 for a quick synthetic test).
    B = 8
    C = 128            # self.channels
    NUM_PROTO = 2
    NUM_CLASSES = 10
    ALPHA = 0.05

    key = jax.random.PRNGKey(0)
    kx, kw, kp = jax.random.split(key, 3)
    x = jax.random.normal(kx, (B, C, 1, 1), dtype=jnp.float32)              # NCHW
    conv_weight = jax.random.normal(kw, (C, C, 1, 1), dtype=jnp.float32) * 0.05
    protos = jax.random.normal(kp, (NUM_PROTO * NUM_CLASSES, C), dtype=jnp.float32)

    out = adsnet_classifier_forward(
        x, conv_weight, protos,
        num_proto=NUM_PROTO, num_classes=NUM_CLASSES, alpha=ALPHA)
    out = jax.block_until_ready(out)
    assert out.shape == (B, NUM_CLASSES)

    # bf16-MXU-matched reference (same operand casts as the kernel): tight check.
    ref_bf16 = _reference_forward(
        x, conv_weight, protos, num_proto=NUM_PROTO, num_classes=NUM_CLASSES,
        alpha=ALPHA, mxu_dtype=_MXU_DTYPE)
    np.testing.assert_allclose(np.asarray(out), np.asarray(ref_bf16),
                               rtol=0.0, atol=5e-3)

    # Full-precision reference: semantic sanity with a looser tolerance, since
    # alpha=0.05 amplifies bf16 rounding of the cosine logits before the sigmoid.
    ref_f32 = _reference_forward(
        x, conv_weight, protos, num_proto=NUM_PROTO, num_classes=NUM_CLASSES,
        alpha=ALPHA, mxu_dtype=jnp.float32)
    np.testing.assert_allclose(np.asarray(out), np.asarray(ref_f32),
                               rtol=0.0, atol=3e-2)

    print("KERNEL_OK")
</pallas_src>

<mosaic_0001>
module attributes {stable_mosaic.version = 11 : i64} {
  func.func @adsnet_kernel(%arg0: i32, %arg1: memref<8x128xbf16, #tpu.memory_space<vmem>>, %arg2: memref<128x128xbf16, #tpu.memory_space<vmem>>, %arg3: memref<128x256xbf16, #tpu.memory_space<vmem>>, %arg4: memref<8x128xf32, #tpu.memory_space<vmem>>) attributes {dimension_semantics = [#tpu.dimension_semantics<parallel>], iteration_bounds = array<i64: 1>, scalar_prefetch = 0 : i64, scratch_operands = 0 : i64, tpu.core_type = #tpu.core_type<tc>, window_params = [{transform_indices = @transform_0, window_bounds = array<i64: 8, 128>}, {pipeline_mode = #tpu.pipeline_mode<synchronous>, transform_indices = @transform_1, window_bounds = array<i64: 128, 128>}, {pipeline_mode = #tpu.pipeline_mode<synchronous>, transform_indices = @transform_2, window_bounds = array<i64: 128, 256>}, {transform_indices = @transform_3, window_bounds = array<i64: 8, 128>}]} {
    %c0 = arith.constant 0 : index
    %c0_0 = arith.constant 0 : index
    %0 = vector.load %arg1[%c0, %c0_0] : memref<8x128xbf16, #tpu.memory_space<vmem>>, vector<8x128xbf16>
    %c0_1 = arith.constant 0 : index
    %c0_2 = arith.constant 0 : index
    %1 = vector.load %arg2[%c0_1, %c0_2] : memref<128x128xbf16, #tpu.memory_space<vmem>>, vector<128x128xbf16>
    %cst = arith.constant dense<0.000000e+00> : vector<8x128xf32>
    %2 = tpu.matmul %0, %1, %cst {dimension_numbers = #tpu.dot_dimension_numbers<[1], [1], [0], [0], [0, 0, 1, 0], [], []>} : vector<8x128xbf16>, vector<128x128xbf16>, vector<8x128xf32> -> vector<8x128xf32>
    %3 = arith.negf %2 : vector<8x128xf32>
    %4 = math.exp %3 : vector<8x128xf32>
    %cst_3 = arith.constant 1.000000e+00 : f32
    %5 = vector.broadcast %cst_3 : f32 to vector<8x128xf32>
    %6 = arith.addf %5, %4 : vector<8x128xf32>
    %7 = arith.divf %5, %6 : vector<8x128xf32>
    %8 = arith.mulf %7, %7 : vector<8x128xf32>
    %cst_4 = arith.constant dense<0.000000e+00> : vector<8xf32>
    %9 = vector.multi_reduction <add>, %8, %cst_4 [1] : vector<8x128xf32> to vector<8xf32>
    %10 = vector.shape_cast %9 : vector<8xf32> to vector<8x1xf32>
    %cst_5 = arith.constant 1.000000e-24 : f32
    %11 = vector.broadcast %cst_5 : f32 to vector<8x1xf32>
    %12 = arith.maximumf %10, %11 : vector<8x1xf32>
    %13 = math.rsqrt %12 : vector<8x1xf32>
    %14 = vector.broadcast %13 : vector<8x1xf32> to vector<8x128xf32>
    %15 = arith.mulf %7, %14 : vector<8x128xf32>
    %16 = arith.truncf %15 : vector<8x128xf32> to vector<8x128xbf16>
    %c0_6 = arith.constant 0 : index
    %c0_7 = arith.constant 0 : index
    %17 = vector.load %arg3[%c0_6, %c0_7] : memref<128x256xbf16, #tpu.memory_space<vmem>>, vector<128x256xbf16>
    %cst_8 = arith.constant dense<0.000000e+00> : vector<8x256xf32>
    %18 = tpu.matmul %16, %17, %cst_8 {dimension_numbers = #tpu.dot_dimension_numbers<[1], [0], [0], [1], [0, 0, 1, 1], [], []>} : vector<8x128xbf16>, vector<128x256xbf16>, vector<8x256xf32> -> vector<8x256xf32>
    %19 = vector.extract_strided_slice %18 {offsets = [0, 0], sizes = [8, 128], strides = [1, 1]} : vector<8x256xf32> to vector<8x128xf32>
    %20 = vector.extract_strided_slice %18 {offsets = [0, 128], sizes = [8, 128], strides = [1, 1]} : vector<8x256xf32> to vector<8x128xf32>
    %21 = arith.maximumf %19, %20 : vector<8x128xf32>
    %cst_9 = arith.constant 2.000000e+01 : f32
    %22 = vector.broadcast %cst_9 : f32 to vector<8x128xf32>
    %23 = arith.mulf %21, %22 : vector<8x128xf32>
    %24 = arith.negf %23 : vector<8x128xf32>
    %25 = math.exp %24 : vector<8x128xf32>
    %cst_10 = arith.constant 1.000000e+00 : f32
    %26 = vector.broadcast %cst_10 : f32 to vector<8x128xf32>
    %27 = arith.addf %26, %25 : vector<8x128xf32>
    %28 = arith.divf %26, %27 : vector<8x128xf32>
    %c0_11 = arith.constant 0 : index
    %c0_12 = arith.constant 0 : index
    %29 = vector.load %arg4[%c0_11, %c0_12] : memref<8x128xf32, #tpu.memory_space<vmem>>, vector<8x128xf32>
    tpu.vector_store %arg4[%c0_11, %c0_12], %28 {strides = array<i32>} : memref<8x128xf32, #tpu.memory_space<vmem>>, vector<8x128xf32>,
    return
  }
  func.func @transform_0(%arg0: i32) -> (i32, i32) {
    %c0_i32 = arith.constant 0 : i32
    %c0_i32_0 = arith.constant 0 : i32
    return %arg0, %c0_i32 : i32, i32
  }
  func.func @transform_1(%arg0: i32) -> (i32, i32) {
    %c0_i32 = arith.constant 0 : i32
    %c0_i32_0 = arith.constant 0 : i32
    %c0_i32_1 = arith.constant 0 : i32
    return %c0_i32, %c0_i32_0 : i32, i32
  }
  func.func @transform_2(%arg0: i32) -> (i32, i32) {
    %c0_i32 = arith.constant 0 : i32
    %c0_i32_0 = arith.constant 0 : i32
    %c0_i32_1 = arith.constant 0 : i32
    return %c0_i32, %c0_i32_0 : i32, i32
  }
  func.func @transform_3(%arg0: i32) -> (i32, i32) {
    %c0_i32 = arith.constant 0 : i32
    %c0_i32_0 = arith.constant 0 : i32
    return %arg0, %c0_i32 : i32, i32
  }
}

</mosaic_0001>

<bundles_post_ra>
// kernel: tpu_custom_call.1
= control target key start
LH: loop header
LB: loop body
LE: loop exit
PB: predicated region body
PF: predicated region fallthrough
CT: control target
= control target key end

     0   :  { %8 = vsyncpa [#allocation3], 0  ;;  %s572_s0 = inlined_call_operand.hbm [shape: bf16[8,128], index: 0, kind: input, shape index: {}]   ;;  %s573_s1 = inlined_call_operand.hbm [shape: bf16[128,128], index: 1, kind: input, shape index: {}]   ;;  %s574_s2 = inlined_call_operand.hbm [shape: bf16[128,256], index: 2, kind: input, shape index: {}]   ;;  %s575_s3 = inlined_call_operand.hbm [shape: f32[8,128], index: 3, kind: output, shape index: {}]  }
   0x1   :  { %9 = vsyncpa [#allocation6], 0 }
   0x2   :  { %10 = vsyncpa [#allocation4], 0  ;;  %s529_s12 = smov [#allocation5]  }
   0x3   :  { %s26_s13 = sshll.u32 %s529_s12, 4  ;;  %s27_s13 = int_to_ptr.vmem [resolvable:$true] %s26_s13 }
   0x4   :  { %s451_s14 = scalar_lea.vmem %s27_s13, 1024  ;;  %p456_p1 = scmp.lt.s32.totalorder %s27_s13, %s27_s13 }
   0x5   :  { %p452_p0 = scmp.ne.s32.totalorder %s27_s13, %s451_s14  ;;  %p457_p2 = scmp.lt.s32.totalorder %s451_s14, %s451_s14 }
   0x7   :  { %p458_p3 = por %p457_p2, %p456_p1 }
   0x9   :  { %p459_p4 = pnand %p458_p3, %p452_p0 }
   0xb   :  { %462 = shalt.err (!%p459_p4)
}
   0xc   :  { %s530_s15 = smov 64   ;;  %s531_s16 = smov 4  }
   0xd   :  { %32 = dma.hbm_to_vmem [thread:$0]  %s573_s1, 1024, %s27_s13, [#allocation6], %s530_s15, %s530_s15, %s531_s16  }
   0xe   :  { %s532_s19 = smov [#allocation2]   ;;  %s533_s21 = smov [#allocation7]  }
   0xf   :  { %s17_s20 = sshll.u32 %s532_s19, 4  ;;  %s38_s22 = sshll.u32 %s533_s21, 4  ;;  %s18_s20 = int_to_ptr.vmem [resolvable:$true] %s17_s20  ;;  %s39_s22 = int_to_ptr.vmem [resolvable:$true] %s38_s22 }
  0x10   :  { %s471_s23 = scalar_lea.vmem %s18_s20, 64  ;;  %p476_p6 = scmp.lt.s32.totalorder %s18_s20, %s18_s20 }
  0x11   :  { %p472_p5 = scmp.ne.s32.totalorder %s18_s20, %s471_s23  ;;  %p477_p7 = scmp.lt.s32.totalorder %s471_s23, %s471_s23 }
  0x13   :  { %p478_p8 = por %p477_p7, %p476_p6 }
  0x15   :  { %p479_p9 = pnand %p478_p8, %p472_p5 }
  0x17   :  { %482 = shalt.err (!%p479_p9)
}
  0x18   :  { %20 = dma.hbm_to_vmem [thread:$0]  %s572_s0, 64, %s18_s20, [#allocation3]  }
  0x19   :  { %s491_s26 = scalar_lea.vmem %s39_s22, 2048  ;;  %p496_p11 = scmp.lt.s32.totalorder %s39_s22, %s39_s22 }
  0x1a   :  { %p492_p10 = scmp.ne.s32.totalorder %s39_s22, %s491_s26  ;;  %p497_p12 = scmp.lt.s32.totalorder %s491_s26, %s491_s26 }
  0x1c   :  { %p498_p13 = por %p497_p12, %p496_p11 }
  0x1e   :  { %p499_p0 = pnand %p498_p13, %p492_p10 }
  0x20   :  { %502 = shalt.err (!%p499_p0)
}
  0x21   :  { %s534_s1 = smov 128   ;;  %s535_s27 = smov 8  }
  0x22   :  { %44 = dma.hbm_to_vmem [thread:$0]  %s574_s2, 2048, %s39_s22, [#allocation6], %s534_s1, %s534_s1, %s535_s27  }
  0x23   :  { %523 = dma.done.wait [#allocation3], 64  }
  0x24   :  { %524 = vsyncadd [#allocation3], 4294967232 }
  0x25   :  { %525 = dma.done.wait [#allocation6], 3072  }
  0x26   :  { %526 = vsyncadd [#allocation6], 4294964224  ;;  %v536_v0 = vmov 0.0   ;;  %vm537_vm0 = vmmov 0   ;;  %v401_v1 = vld [vmem:[#allocation5 + $0x38] sm:$0xff]   ;;  %v402_v2 = vld [vmem:[#allocation5 + $0x30] sm:$0xff]  }
  0x27   :  { %370 = vmatprep.subr.bf16.mxu0 %v536_v0  ;;  %386 = vmatprep.mubr.msk.bf16.mxu0 %vm537_vm0, %v536_v0  ;;  %v403_v3 = vld [vmem:[#allocation5 + $0x28] sm:$0xff]   ;;  %v404_v4 = vld [vmem:[#allocation5 + $0x20] sm:$0xff]   ;;  %v405_v5 = vld [vmem:[#allocation5 + $0x18] sm:$0xff]   ;;  %v538_v31 = vmov 0   ;;  %s539_s0 = smov [#allocation8]  }
  0x28   :  { %371 = vmatpush3.bf16.xpose.msra.mxu0 %v401_v1  ;;  %v406_v6 = vld [vmem:[#allocation5 + $0x10] sm:$0xff]   ;;  %v407_v7 = vld [vmem:[#allocation5 + $0x8] sm:$0xff]   ;;  %v408_v8 = vld [vmem:[#allocation5] sm:$0xff]   ;;  %301 = vmatprep.mubr.bf16.mxu1 %v538_v31  ;;  %s325_s2 = sshll.u32 %s539_s0, 4  ;;  %s326_s2 = int_to_ptr.vmem [resolvable:$true] %s325_s2 }
  0x29   :  { %372 = vmatprep.subr.bf16.mxu0 %v536_v0  ;;  %v55_v9 = vld [vmem:[#allocation2] sm:$0xf]  ;;  %v411_v11 = vld [vmem:[#allocation7 + $0x70] ss:$8 sps:$4 sm:$0xff]   ;;  %v412_v12 = vld [vmem:[#allocation7 + $0x64] ss:$8 sps:$4 sm:$0xff]   ;;  %p508_p2 = scmp.lt.s32.totalorder %s326_s2, %s326_s2 }
  0x2a   :  { %v409_v10 = vld [vmem:[#allocation7 + $0x74] ss:$8 sps:$4 sm:$0xff]   ;;  %v414_v13 = vld [vmem:[#allocation7 + $0x60] ss:$8 sps:$4 sm:$0xff]   ;;  %v417_v15 = vld [vmem:[#allocation7 + $0x50] ss:$8 sps:$4 sm:$0xff]  }
  0x2b   :  { %269 = vmatprep.subr.bf16.mxu1 %v409_v10  ;;  %v415_v14 = vld [vmem:[#allocation7 + $0x54] ss:$8 sps:$4 sm:$0xff]   ;;  %v418_v25 = vld [vmem:[#allocation7 + $0x44] ss:$8 sps:$4 sm:$0xff]   ;;  %v420_v26 = vld [vmem:[#allocation7 + $0x40] ss:$8 sps:$4 sm:$0xff]  }
  0x2c   :  { %270 = vmatpush1.bf16.msra.mxu1 %v411_v11  ;;  %v421_v27 = vld [vmem:[#allocation7 + $0x34] ss:$8 sps:$4 sm:$0xff]   ;;  %v423_v28 = vld [vmem:[#allocation7 + $0x30] ss:$8 sps:$4 sm:$0xff]   ;;  %v424_v29 = vld [vmem:[#allocation7 + $0x24] ss:$8 sps:$4 sm:$0xff]  }
  0x2d   :  { %271 = vmatprep.subr.bf16.mxu1 %v412_v12  ;;  %v426_v30 = vld [vmem:[#allocation7 + $0x20] ss:$8 sps:$4 sm:$0xff]   ;;  %v427_v32 = vld [vmem:[#allocation7 + $0x14] ss:$8 sps:$4 sm:$0xff]   ;;  %v429_v33 = vld [vmem:[#allocation7 + $0x10] ss:$8 sps:$4 sm:$0xff]  }
  0x2e   :  { %v430_v34 = vld [vmem:[#allocation7 + $0x4] ss:$8 sps:$4 sm:$0xff]   ;;  %v432_v35 = vld [vmem:[#allocation7] ss:$8 sps:$4 sm:$0xff]   ;;  %s503_s30 = scalar_lea.vmem %s326_s2, 128 }
  0x2f   :  { %p504_p1 = scmp.ne.s32.totalorder %s326_s2, %s503_s30  ;;  %p509_p3 = scmp.lt.s32.totalorder %s503_s30, %s503_s30 }
  0x30   :  { %373 = vmatpush3.bf16.xpose.msra.mxu0 %v402_v2  ;;  %272 = vmatpush1.bf16.msra.mxu1 %v414_v13 }
  0x31   :  { %374 = vmatprep.subr.bf16.mxu0 %v536_v0  ;;  %273 = vmatprep.subr.bf16.mxu1 %v415_v14  ;;  %p510_p4 = por %p509_p3, %p508_p2 }
  0x33   :  { %p511_p5 = pnand %p510_p4, %p504_p1 }
  0x34   :  { %274 = vmatpush1.bf16.msra.mxu1 %v417_v15 }
  0x35   :  { %275 = vmatprep.subr.bf16.mxu1 %v418_v25 }
  0x38   :  { %375 = vmatpush3.bf16.xpose.msra.mxu0 %v403_v3  ;;  %276 = vmatpush1.bf16.msra.mxu1 %v420_v26 }
  0x39   :  { %376 = vmatprep.subr.bf16.mxu0 %v536_v0  ;;  %277 = vmatprep.subr.bf16.mxu1 %v421_v27 }
  0x3c   :  { %278 = vmatpush1.bf16.msra.mxu1 %v423_v28 }
  0x3d   :  { %279 = vmatprep.subr.bf16.mxu1 %v424_v29 }
  0x40   :  { %377 = vmatpush3.bf16.xpose.msra.mxu0 %v404_v4  ;;  %280 = vmatpush1.bf16.msra.mxu1 %v426_v30 }
  0x41   :  { %378 = vmatprep.subr.bf16.mxu0 %v536_v0  ;;  %281 = vmatprep.subr.bf16.mxu1 %v427_v32 }
  0x44   :  { %282 = vmatpush1.bf16.msra.mxu1 %v429_v33 }
  0x45   :  { %283 = vmatprep.subr.bf16.mxu1 %v430_v34 }
  0x48   :  { %379 = vmatpush3.bf16.xpose.msra.mxu0 %v405_v5  ;;  %284 = vmatpush1.bf16.msra.mxu1 %v432_v35 }
  0x49   :  { %380 = vmatprep.subr.bf16.mxu0 %v536_v0 }
  0x50   :  { %381 = vmatpush3.bf16.xpose.msra.mxu0 %v406_v6 }
  0x51   :  { %382 = vmatprep.subr.bf16.mxu0 %v536_v0 }
  0x58   :  { %383 = vmatpush3.bf16.xpose.msra.mxu0 %v407_v7 }
  0x59   :  { %384 = vmatprep.subr.bf16.mxu0 %v536_v0 }
  0x60   :  { %385 = vmatpush3.bf16.xpose.msra.mxu0 %v408_v8 }
  0x67   :  { %387 = vmatmul.mubr.bf16.vlgmr.msra.gmra.mxu0 %v55_v9 }
 0x127   :  { %v154_v16 = vpop.f32.mrf.mxu0 }
 0x128   :  { %v343_v17 = vmul.f32 -1.442695, %v154_v16 }
 0x129   :  { %v388_v18 = vpop.f32.mrf.mxu0 }
 0x12a   :  { %433 = vpow2.f32 %v343_v17 }
 0x12b   :  { %v157_v19 = vpop.f32.mrf.mxu0 }
 0x12d   :  { %v389_v20 = vpop.f32.mrf.mxu0 }
 0x137   :  { %v434_v21 = vpop.eup %433 }
 0x138   :  { %v163_v22 = vadd.f32 1.0, %v434_v21 }
 0x13a   :  { %435 = vrcp.f32 %v163_v22 }
 0x147   :  { %v436_v23 = vpop.eup %435 }
 0x148   :  { %v166_v24 = vmul.f32 %v436_v23, %v436_v23 }
 0x14a   :  { %167 = vadd.xlane.f32.xlu0 %v166_v24 }
 0x1d3   :  { %v168_v36 = vpop.xlane.xlu0 %167 }
 0x1d4   :  { %v169_v37 = vmax.f32 %v168_v36, 1e-24 }
 0x1d6   :  { %437 = vrsqrt.f32 %v169_v37 }
 0x1e3   :  { %v438_v38 = vpop.eup %437 }
 0x1e4   :  { %v171_v39 = vmul.f32 %v438_v38, %v436_v23 }
 0x1e6   :  { %v172_v40 = vpack.c.bf16 %v171_v39, %v171_v39 }
 0x1e8   :  { %302 = vmatmul.mubr.bf16.vlgmr.msra.gmra.mxu1 %v172_v40 }
 0x2a8   :  { %v303_v41 = vpop.f32.mrf.mxu1 }
 0x2aa   :  { %v305_v42 = vpop.f32.mrf.mxu1 }
 0x2ab   :  { %v310_v43 = vmax.f32 %v303_v41, %v305_v42 }
 0x2ac   :  { %v307_v44 = vpop.f32.mrf.mxu1 }
 0x2ad   :  { %v360_v45 = vmul.f32 -20.0, %v310_v43 }
 0x2ae   :  { %v308_v46 = vpop.f32.mrf.mxu1 }
 0x2af   :  { %v313_v47 = vmul.f32 1.442695, %v360_v45 }
 0x2b1   :  { %439 = vpow2.f32 %v313_v47 }
 0x2be   :  { %v440_v48 = vpop.eup %439 }
 0x2bf   :  { %v315_v49 = vadd.f32 1.0, %v440_v48 }
 0x2c1   :  { %441 = vrcp.f32 %v315_v49 }
 0x2ce   :  { %v442_v50 = vpop.eup %441 }
 0x2cf   :  { %318 = vst [vmem:[#allocation8] sm:$0xff] %v442_v50 }
 0x2d0   :  { %514 = shalt.err (!%p511_p5)
}
 0x2d1   :  { %328 = dma.vmem_to_hbm [thread:$0]  %s326_s2, 128, %s575_s3, [#allocation4]  }
 0x2d2   :  { %527 = dma.done.wait [#allocation4], 128  }
 0x2d3   :  { %528 = vsyncadd [#allocation4], 4294967168 }
 0x2d4   :  { %332 = vsyncpa [#allocation3], 1 }
 0x2d5   :  { %333 = vsyncpa [#allocation6], 1 }
 0x2d6   :  { %334 = vsyncpa [#allocation4], 1 }

</bundles_post_ra>
